<compile_context>
chip_gen: v7x
topology: tpu7x:2x2x1
jax: 0.10.0
libtpu: 0.0.40
codegen_flags: <defaults>
</compile_context>

<pallas_src>
import functools

import jax
import jax.numpy as jnp
from jax.experimental import pallas as pl
from jax.experimental.pallas import tpu as pltpu


# ----------------------------- kernels ------------------------------------- #

def curiosity_fused_kernel(x_ref, action_ref, w_phi_ref, w_head_ref,
                           w_tail_ref, bias_ref, out_ref, *, action_size):
    """Fused AC.forward(state) + ICM intrinsic reward.

    x_ref      : [2B, F]   f32   (state rows 0..B, next_state rows B..2B)
    w_phi_ref  : [F, 128]  bf16  (phi weight, lane-padded)
    w_head_ref : [128, 256] bf16 (cols 0..128 = policy|value head,
                                  cols 128..256 = forward1 phi-part)
    w_tail_ref : [144, 128] bf16 (rows 0..128 = pred_state, rows 128..144 =
                                  forward1 action-part, zero-padded)
    bias_ref   : [4, 128]  f32   (rows: b_phi, b_pv, b_f1, b_ps)
    out_ref    : [B, 128]  f32   (policy | value | reward | 0-pad)
    """
    B = x_ref.shape[0] // 2
    LP = w_phi_ref.shape[1]                      # 128 (lane-padded feature dim)
    bf16 = jnp.bfloat16

    bias = bias_ref[...]                                                # [4, LP]

    # phi(state) and phi(next_state) in one MXU push on the stacked input.
    phi_all = jnp.maximum(
        jnp.dot(x_ref[...].astype(bf16), w_phi_ref[...],
                preferred_element_type=jnp.float32) + bias[0:1, :], 0.0)  # [2B,LP]
    phi1 = phi_all[:B, :]                                               # phi(s)
    phi2 = phi_all[B:, :]                                               # phi(s')

    # Merged (policy|value | forward1-phi-part) head: ONE matmul, sliced at
    # the 128-lane tile boundary.
    y = jnp.dot(phi1.astype(bf16), w_head_ref[...],
                preferred_element_type=jnp.float32)                     # [B, 2LP]
    pv = y[:, :LP] + bias[1:2, :]                                       # [B, LP]
    f1_pre = y[:, LP:] + bias[2:3, :]                                   # [B, LP]

    # Softmax over the first `action_size` lanes (pad lanes masked to -inf).
    col = jax.lax.broadcasted_iota(jnp.int32, pv.shape, 1)
    is_logit = col < action_size
    masked = jnp.where(is_logit, pv, -1e30)
    m = jnp.max(masked, axis=1, keepdims=True)
    e = jnp.exp(masked - m)                     # pad lanes underflow to exactly 0
    inv_sum = pl.reciprocal(jnp.sum(e, axis=1, keepdims=True), approx=False)
    policy = e * inv_sum                                                # [B, LP]

    # ICM intrinsic reward.  One-hot built in-kernel from int32 actions,
    # padded to the 16 sublane-aligned action rows of w_tail.
    n_act_rows = w_tail_ref.shape[0] - LP                               # 16
    act = action_ref[...]                                               # [B, 1]
    onehot = jnp.where(
        jax.lax.broadcasted_iota(jnp.int32, (B, n_act_rows), 1) == act,
        1.0, 0.0).astype(bf16)                                          # [B, 16]
    w_f1_act = w_tail_ref[pl.ds(LP, n_act_rows), :]                     # [16, LP]
    w_ps = w_tail_ref[pl.ds(0, LP), :]                                  # [LP, LP]

    f1 = jnp.maximum(
        f1_pre + jnp.dot(onehot, w_f1_act,
                         preferred_element_type=jnp.float32), 0.0)      # [B, LP]
    phi_pred = (jnp.dot(f1.astype(bf16), w_ps,
                        preferred_element_type=jnp.float32) + bias[3:4, :])
    d = phi_pred - phi2                         # pad lanes are exactly 0 - 0
    reward = 0.5 * jnp.sum(d * d, axis=1, keepdims=True)                # [B, 1]

    # Lane-dense packed output: [policy | value | reward | 0-pad].
    out_ref[...] = jnp.where(is_logit, policy,
                   jnp.where(col == action_size, pv,
                   jnp.where(col == action_size + 1, reward, 0.0)))


def ac_forward_kernel(state_ref, w_phi_ref, w_pv_ref, bias_ref, out_ref, *,
                      action_size):
    """Slim policy/value-only path (Curiosity.forward) — no ICM dead work."""
    bf16 = jnp.bfloat16
    bias = bias_ref[...]
    phi = jnp.maximum(
        jnp.dot(state_ref[...].astype(bf16), w_phi_ref[...],
                preferred_element_type=jnp.float32) + bias[0:1, :], 0.0)
    pv = (jnp.dot(phi.astype(bf16), w_pv_ref[...],
                  preferred_element_type=jnp.float32) + bias[1:2, :])
    col = jax.lax.broadcasted_iota(jnp.int32, pv.shape, 1)
    is_logit = col < action_size
    masked = jnp.where(is_logit, pv, -1e30)
    m = jnp.max(masked, axis=1, keepdims=True)
    e = jnp.exp(masked - m)
    inv_sum = pl.reciprocal(jnp.sum(e, axis=1, keepdims=True), approx=False)
    out_ref[...] = jnp.where(is_logit, e * inv_sum,
                   jnp.where(col == action_size, pv, 0.0))


# ----------------------------- wrappers ------------------------------------ #

_VMEM = pl.BlockSpec(memory_space=pltpu.MemorySpace.VMEM)


def curiosity_step(state, action, next_state, params, action_size):
    """Fused Curiosity step.

    Returns (policy, value, intr_reward) where (policy, value) equals
    Curiosity.forward(state) and intr_reward equals
    Curiosity.intrinsic_reward(state, action, next_state).
    """
    B = state.shape[0]
    LP = params["w_phi"].shape[1]
    x = jnp.concatenate([state, next_state], axis=0)        # [2B, F], one DMA
    action_col = action.astype(jnp.int32).reshape(B, 1)
    out = pl.pallas_call(
        functools.partial(curiosity_fused_kernel, action_size=action_size),
        out_shape=jax.ShapeDtypeStruct((B, LP), jnp.float32),
        in_specs=[_VMEM] * 6,
        out_specs=_VMEM,
    )(x, action_col, params["w_phi"], params["w_head"],
      params["w_tail"], params["biases"])
    policy = out[:, :action_size]
    value = out[:, action_size:action_size + 1]
    reward = out[:, action_size + 1]
    return policy, value, reward


def forward(state, params, action_size):
    """Curiosity.forward(state) == AC.forward(state) -> (policy, value)."""
    B = state.shape[0]
    LP = params["w_phi"].shape[1]
    out = pl.pallas_call(
        functools.partial(ac_forward_kernel, action_size=action_size),
        out_shape=jax.ShapeDtypeStruct((B, LP), jnp.float32),
        in_specs=[_VMEM] * 4,
        out_specs=_VMEM,
    )(state, params["w_phi"], params["w_pv"], params["biases"])
    return out[:, :action_size], out[:, action_size:action_size + 1]


def intrinsic_reward(state, action, next_state, params, action_size):
    """Curiosity.intrinsic_reward(state, action, next_state) -> [B]."""
    _, _, reward = curiosity_step(state, action, next_state, params, action_size)
    return reward


# ----------------------------- param init ---------------------------------- #

def init_params(key, input_size, dense_size, action_size):
    """PyTorch-convention Linear init, then one-time layout transforms:
    transpose to [in, out], zero-pad feature dims to 128 lanes, merge the
    policy/value head with forward1's phi-part, stack pred_state with
    forward1's action-part, pack biases, cast matmul weights to bf16."""
    LP = 128                 # lane-padded feature width
    ACT_PAD = 16             # sublane-aligned action-row pad for w_tail
    assert dense_size <= LP and action_size + 2 <= LP and action_size <= ACT_PAD

    ks = jax.random.split(key, 5)

    def lin(k, out_f, in_f):
        scale = 1.0 / jnp.sqrt(float(in_f))
        kw, kb = jax.random.split(k)
        w = jax.random.uniform(kw, (out_f, in_f), jnp.float32, -scale, scale)
        b = jax.random.uniform(kb, (out_f,), jnp.float32, -scale, scale)
        return w, b

    D, F_, A = dense_size, input_size, action_size
    w_phi, b_phi = lin(ks[0], D, F_)                      # shared phi
    w_pi, b_pi = lin(ks[1], A, D)                         # policy head
    w_v, b_v = lin(ks[2], 1, D)                           # value head
    w_f1, b_f1 = lin(ks[3], D, D + A)                     # ICM.forward1
    w_ps, b_ps = lin(ks[4], D, D)                         # ICM.pred_state

    # phi weight, lane-padded: [F, 128]
    w_phi_pad = jnp.zeros((F_, LP), jnp.float32).at[:, :D].set(w_phi.T)

    # merged head [128, 256]: cols 0..A logits, col A value, cols 128..128+D
    # forward1 phi-part; everything else zero.
    w_head = jnp.zeros((LP, 2 * LP), jnp.float32)
    w_head = w_head.at[:D, :A].set(w_pi.T)
    w_head = w_head.at[:D, A:A + 1].set(w_v.T)
    w_head = w_head.at[:D, LP:LP + D].set(w_f1[:, :D].T)

    # tail [144, 128]: rows 0..128 pred_state, rows 128..128+A forward1
    # action-part; zero-padded.
    w_tail = jnp.zeros((LP + ACT_PAD, LP), jnp.float32)
    w_tail = w_tail.at[:D, :D].set(w_ps.T)
    w_tail = w_tail.at[LP:LP + A, :D].set(w_f1[:, D:].T)

    # packed biases [4, 128]: b_phi, b_pv (logits|value), b_f1, b_ps.
    biases = jnp.zeros((4, LP), jnp.float32)
    biases = biases.at[0, :D].set(b_phi)
    biases = biases.at[1, :A].set(b_pi)
    biases = biases.at[1, A].set(b_v[0])
    biases = biases.at[2, :D].set(b_f1)
    biases = biases.at[3, :D].set(b_ps)

    bf16 = jnp.bfloat16
    return dict(
        w_phi=w_phi_pad.astype(bf16),
        w_head=w_head.astype(bf16),
        w_pv=w_head[:, :LP].astype(bf16),   # slim forward-only head
        w_tail=w_tail.astype(bf16),
        biases=biases)


# ----------------------------- pure-JAX reference --------------------------- #

def curiosity_reference(state, action, next_state, params, action_size):
    """Reference with the same bf16 operand rounding / f32 accumulation."""
    def mm(x, w_bf16):
        return jnp.dot(x.astype(jnp.bfloat16).astype(jnp.float32),
                       w_bf16.astype(jnp.float32))
    b = params["biases"]
    LP = params["w_phi"].shape[1]
    phi1 = jnp.maximum(mm(state, params["w_phi"]) + b[0:1], 0.0)
    phi2 = jnp.maximum(mm(next_state, params["w_phi"]) + b[0:1], 0.0)
    y = mm(phi1, params["w_head"])
    pv = y[:, :LP] + b[1:2]
    policy = jax.nn.softmax(pv[:, :action_size], axis=1)
    value = pv[:, action_size:action_size + 1]
    n_act_rows = params["w_tail"].shape[0] - LP
    onehot = jax.nn.one_hot(action, n_act_rows, dtype=jnp.float32)
    f1 = jnp.maximum(y[:, LP:] + mm(onehot, params["w_tail"][LP:]) + b[2:3], 0.0)
    phi_pred = mm(f1, params["w_tail"][:LP]) + b[3:4]
    reward = 0.5 * jnp.sum(jnp.square(phi_pred - phi2), axis=1)
    return policy, value, reward


# ----------------------------- main ----------------------------------------- #

if __name__ == "__main__":
    B, INPUT, DENSE, ACTIONS = 8, 32, 32, 4

    key = jax.random.PRNGKey(0)
    k_state, k_next, k_act, k_param = jax.random.split(key, 4)

    state = jax.random.normal(k_state, (B, INPUT), jnp.float32)
    next_state = jax.random.normal(k_next, (B, INPUT), jnp.float32)
    action = jax.random.randint(k_act, (B,), 0, ACTIONS, jnp.int32)

    params = init_params(k_param, INPUT, DENSE, ACTIONS)

    # Fused launch: Curiosity.forward(state) + intrinsic_reward(s, a, s').
    policy, value, reward = jax.block_until_ready(
        curiosity_step(state, action, next_state, params, ACTIONS))
    # Slim policy/value-only launch (no ICM dead work).
    p_fwd, v_fwd = jax.block_until_ready(forward(state, params, ACTIONS))

    assert policy.shape == (B, ACTIONS)
    assert value.shape == (B, 1)
    assert reward.shape == (B,)
    assert jnp.allclose(jnp.sum(policy, axis=1), 1.0, atol=1e-3)
    assert bool(jnp.all(reward >= 0.0))

    # Validate against the pure-JAX reference (bf16 matmul operands introduce
    # small benign deltas).
    p_ref, v_ref, r_ref = curiosity_reference(state, action, next_state,
                                              params, ACTIONS)
    assert jnp.allclose(policy, p_ref, atol=1e-2, rtol=1e-2)
    assert jnp.allclose(value, v_ref, atol=1e-2, rtol=1e-2)
    assert jnp.allclose(reward, r_ref, atol=1e-2, rtol=1e-2)
    assert jnp.allclose(p_fwd, p_ref, atol=1e-2, rtol=1e-2)
    assert jnp.allclose(v_fwd, v_ref, atol=1e-2, rtol=1e-2)

    print("KERNEL_OK")
</pallas_src>

<mosaic_0001>
module attributes {stable_mosaic.version = 11 : i64} {
  func.func @curiosity_fused_kernel(%arg0: memref<16x32xf32, #tpu.memory_space<vmem>>, %arg1: memref<8x1xi32, #tpu.memory_space<vmem>>, %arg2: memref<32x128xbf16, #tpu.memory_space<vmem>>, %arg3: memref<128x256xbf16, #tpu.memory_space<vmem>>, %arg4: memref<144x128xbf16, #tpu.memory_space<vmem>>, %arg5: memref<4x128xf32, #tpu.memory_space<vmem>>, %arg6: memref<8x128xf32, #tpu.memory_space<vmem>>) attributes {dimension_semantics = [], scalar_prefetch = 0 : i64, scratch_operands = 0 : i64, tpu.core_type = #tpu.core_type<tc>} {
    %c0 = arith.constant 0 : index
    %c0_0 = arith.constant 0 : index
    %0 = vector.load %arg5[%c0, %c0_0] : memref<4x128xf32, #tpu.memory_space<vmem>>, vector<4x128xf32>
    %c0_1 = arith.constant 0 : index
    %c0_2 = arith.constant 0 : index
    %1 = vector.load %arg0[%c0_1, %c0_2] : memref<16x32xf32, #tpu.memory_space<vmem>>, vector<16x32xf32>
    %2 = arith.truncf %1 : vector<16x32xf32> to vector<16x32xbf16>
    %c0_3 = arith.constant 0 : index
    %c0_4 = arith.constant 0 : index
    %3 = vector.load %arg2[%c0_3, %c0_4] : memref<32x128xbf16, #tpu.memory_space<vmem>>, vector<32x128xbf16>
    %cst = arith.constant dense<0.000000e+00> : vector<16x128xf32>
    %4 = tpu.matmul %2, %3, %cst {dimension_numbers = #tpu.dot_dimension_numbers<[1], [0], [0], [1], [0, 0, 1, 1], [], []>} : vector<16x32xbf16>, vector<32x128xbf16>, vector<16x128xf32> -> vector<16x128xf32>
    %5 = vector.extract_strided_slice %0 {offsets = [0, 0], sizes = [1, 128], strides = [1, 1]} : vector<4x128xf32> to vector<1x128xf32>
    %6 = vector.broadcast %5 : vector<1x128xf32> to vector<16x128xf32>
    %7 = arith.addf %4, %6 : vector<16x128xf32>
    %cst_5 = arith.constant 0.000000e+00 : f32
    %8 = vector.broadcast %cst_5 : f32 to vector<16x128xf32>
    %9 = arith.maximumf %7, %8 : vector<16x128xf32>
    %10 = vector.extract_strided_slice %9 {offsets = [0, 0], sizes = [8, 128], strides = [1, 1]} : vector<16x128xf32> to vector<8x128xf32>
    %11 = vector.extract_strided_slice %9 {offsets = [8, 0], sizes = [8, 128], strides = [1, 1]} : vector<16x128xf32> to vector<8x128xf32>
    %12 = arith.truncf %10 : vector<8x128xf32> to vector<8x128xbf16>
    %c0_6 = arith.constant 0 : index
    %c0_7 = arith.constant 0 : index
    %13 = vector.load %arg3[%c0_6, %c0_7] : memref<128x256xbf16, #tpu.memory_space<vmem>>, vector<128x256xbf16>
    %cst_8 = arith.constant dense<0.000000e+00> : vector<8x256xf32>
    %14 = tpu.matmul %12, %13, %cst_8 {dimension_numbers = #tpu.dot_dimension_numbers<[1], [0], [0], [1], [0, 0, 1, 1], [], []>} : vector<8x128xbf16>, vector<128x256xbf16>, vector<8x256xf32> -> vector<8x256xf32>
    %15 = vector.extract_strided_slice %14 {offsets = [0, 0], sizes = [8, 128], strides = [1, 1]} : vector<8x256xf32> to vector<8x128xf32>
    %16 = vector.extract_strided_slice %0 {offsets = [1, 0], sizes = [1, 128], strides = [1, 1]} : vector<4x128xf32> to vector<1x128xf32>
    %17 = vector.broadcast %16 : vector<1x128xf32> to vector<8x128xf32>
    %18 = arith.addf %15, %17 : vector<8x128xf32>
    %19 = vector.extract_strided_slice %14 {offsets = [0, 128], sizes = [8, 128], strides = [1, 1]} : vector<8x256xf32> to vector<8x128xf32>
    %20 = vector.extract_strided_slice %0 {offsets = [2, 0], sizes = [1, 128], strides = [1, 1]} : vector<4x128xf32> to vector<1x128xf32>
    %21 = vector.broadcast %20 : vector<1x128xf32> to vector<8x128xf32>
    %22 = arith.addf %19, %21 : vector<8x128xf32>
    %23 = tpu.iota {dimensions = array<i32: 1>} : vector<8x128xi32>
    %c4_i32 = arith.constant 4 : i32
    %24 = vector.broadcast %c4_i32 : i32 to vector<8x128xi32>
    %25 = arith.cmpi slt, %23, %24 : vector<8x128xi32>
    %cst_9 = arith.constant -1.000000e+30 : f32
    %26 = vector.broadcast %cst_9 : f32 to vector<8x128xf32>
    %27 = arith.select %25, %18, %26 : vector<8x128xi1>, vector<8x128xf32>
    %cst_10 = arith.constant dense<0xFF800000> : vector<8xf32>
    %28 = vector.multi_reduction <maximumf>, %27, %cst_10 [1] : vector<8x128xf32> to vector<8xf32>
    %29 = vector.shape_cast %28 : vector<8xf32> to vector<8x1xf32>
    %30 = vector.broadcast %29 : vector<8x1xf32> to vector<8x128xf32>
    %31 = arith.subf %27, %30 : vector<8x128xf32>
    %32 = math.exp %31 : vector<8x128xf32>
    %cst_11 = arith.constant dense<0.000000e+00> : vector<8xf32>
    %33 = vector.multi_reduction <add>, %32, %cst_11 [1] : vector<8x128xf32> to vector<8xf32>
    %34 = vector.shape_cast %33 : vector<8xf32> to vector<8x1xf32>
    %35 = tpu.reciprocal %34 : vector<8x1xf32> -> vector<8x1xf32>
    %36 = vector.broadcast %35 : vector<8x1xf32> to vector<8x128xf32>
    %37 = arith.mulf %32, %36 : vector<8x128xf32>
    %c0_12 = arith.constant 0 : index
    %c0_13 = arith.constant 0 : index
    %38 = vector.load %arg1[%c0_12, %c0_13] : memref<8x1xi32, #tpu.memory_space<vmem>>, vector<8x1xi32>
    %39 = tpu.iota {dimensions = array<i32: 1>} : vector<8x16xi32>
    %40 = vector.broadcast %38 : vector<8x1xi32> to vector<8x16xi32>
    %41 = arith.cmpi eq, %39, %40 : vector<8x16xi32>
    %cst_14 = arith.constant 1.000000e+00 : f32
    %cst_15 = arith.constant 0.000000e+00 : f32
    %42 = vector.broadcast %cst_14 : f32 to vector<8x16xf32>
    %43 = vector.broadcast %cst_15 : f32 to vector<8x16xf32>
    %44 = arith.select %41, %42, %43 : vector<8x16xi1>, vector<8x16xf32>
    %45 = arith.truncf %44 : vector<8x16xf32> to vector<8x16xbf16>
    %c128 = arith.constant 128 : index
    %c0_16 = arith.constant 0 : index
    %46 = vector.load %arg4[%c128, %c0_16] : memref<144x128xbf16, #tpu.memory_space<vmem>>, vector<16x128xbf16>
    %c0_17 = arith.constant 0 : index
    %c0_18 = arith.constant 0 : index
    %47 = vector.load %arg4[%c0_17, %c0_18] : memref<144x128xbf16, #tpu.memory_space<vmem>>, vector<128x128xbf16>
    %cst_19 = arith.constant dense<0.000000e+00> : vector<8x128xf32>
    %48 = tpu.matmul %45, %46, %cst_19 {dimension_numbers = #tpu.dot_dimension_numbers<[1], [0], [0], [1], [0, 0, 1, 1], [], []>} : vector<8x16xbf16>, vector<16x128xbf16>, vector<8x128xf32> -> vector<8x128xf32>
    %49 = arith.addf %22, %48 : vector<8x128xf32>
    %cst_20 = arith.constant 0.000000e+00 : f32
    %50 = vector.broadcast %cst_20 : f32 to vector<8x128xf32>
    %51 = arith.maximumf %49, %50 : vector<8x128xf32>
    %52 = arith.truncf %51 : vector<8x128xf32> to vector<8x128xbf16>
    %cst_21 = arith.constant dense<0.000000e+00> : vector<8x128xf32>
    %53 = tpu.matmul %52, %47, %cst_21 {dimension_numbers = #tpu.dot_dimension_numbers<[1], [0], [0], [1], [0, 0, 1, 1], [], []>} : vector<8x128xbf16>, vector<128x128xbf16>, vector<8x128xf32> -> vector<8x128xf32>
    %54 = vector.extract_strided_slice %0 {offsets = [3, 0], sizes = [1, 128], strides = [1, 1]} : vector<4x128xf32> to vector<1x128xf32>
    %55 = vector.broadcast %54 : vector<1x128xf32> to vector<8x128xf32>
    %56 = arith.addf %53, %55 : vector<8x128xf32>
    %57 = arith.subf %56, %11 : vector<8x128xf32>
    %58 = arith.mulf %57, %57 : vector<8x128xf32>
    %cst_22 = arith.constant dense<0.000000e+00> : vector<8xf32>
    %59 = vector.multi_reduction <add>, %58, %cst_22 [1] : vector<8x128xf32> to vector<8xf32>
    %60 = vector.shape_cast %59 : vector<8xf32> to vector<8x1xf32>
    %cst_23 = arith.constant 5.000000e-01 : f32
    %61 = vector.broadcast %cst_23 : f32 to vector<8x1xf32>
    %62 = arith.mulf %61, %60 : vector<8x1xf32>
    %c4_i32_24 = arith.constant 4 : i32
    %63 = vector.broadcast %c4_i32_24 : i32 to vector<8x128xi32>
    %64 = arith.cmpi eq, %23, %63 : vector<8x128xi32>
    %c5_i32 = arith.constant 5 : i32
    %65 = vector.broadcast %c5_i32 : i32 to vector<8x128xi32>
    %66 = arith.cmpi eq, %23, %65 : vector<8x128xi32>
    %cst_25 = arith.constant 0.000000e+00 : f32
    %67 = vector.shape_cast %62 : vector<8x1xf32> to vector<8x1xf32>
    %68 = vector.broadcast %67 : vector<8x1xf32> to vector<8x128xf32>
    %69 = vector.broadcast %cst_25 : f32 to vector<8x128xf32>
    %70 = arith.select %66, %68, %69 : vector<8x128xi1>, vector<8x128xf32>
    %71 = arith.select %64, %18, %70 : vector<8x128xi1>, vector<8x128xf32>
    %72 = arith.select %25, %37, %71 : vector<8x128xi1>, vector<8x128xf32>
    %c0_26 = arith.constant 0 : index
    %c0_27 = arith.constant 0 : index
    %73 = vector.load %arg6[%c0_26, %c0_27] : memref<8x128xf32, #tpu.memory_space<vmem>>, vector<8x128xf32>
    tpu.vector_store %arg6[%c0_26, %c0_27], %72 {strides = array<i32>} : memref<8x128xf32, #tpu.memory_space<vmem>>, vector<8x128xf32>,
    return
  }
}

</mosaic_0001>

<bundles_post_ra>
// kernel: tpu_custom_call.1
= control target key start
LH: loop header
LB: loop body
LE: loop exit
PB: predicated region body
PF: predicated region fallthrough
CT: control target
= control target key end

     0   :  { %11 = vsyncpa [#allocation3], 0  ;;  %s858_s0 = inlined_call_operand.hbm [shape: f32[16,32], index: 0, kind: input, shape index: {}]   ;;  %s859_s1 = inlined_call_operand.vmem [shape: s32[8,1], index: 1, kind: input, shape index: {}]   ;;  %s860_s2 = inlined_call_operand.vmem [shape: bf16[32,128], index: 2, kind: input, shape index: {}]   ;;  %s861_s3 = inlined_call_operand.hbm [shape: bf16[128,256], index: 3, kind: input, shape index: {}]   ;;  %s862_s4 = inlined_call_operand.hbm [shape: bf16[144,128], index: 4, kind: input, shape index: {}]   ;;  %s863_s5 = inlined_call_operand.vmem [shape: f32[4,128], index: 5, kind: input, shape index: {}]   ;;  %s864_s6 = inlined_call_operand.hbm [shape: f32[8,128], index: 6, kind: output, shape index: {}]  }
   0x1   :  { %12 = vsyncpa [#allocation6], 0 }
   0x2   :  { %13 = vsyncpa [#allocation4], 0  ;;  %s717_s21 = smov [#allocation5]   ;;  %s718_s23 = smov [#allocation2]  }
   0x3   :  { %s35_s22 = sshll.u32 %s717_s21, 4  ;;  %s19_s24 = sshll.u32 %s718_s23, 4  ;;  %s36_s22 = int_to_ptr.vmem [resolvable:$true] %s35_s22  ;;  %s763_s24 = int_to_ptr.vmem [resolvable:$true] %s19_s24 }
   0x4   :  { %s623_s27 = scalar_lea.hbm %s861_s3, 2048 }
   0x5   :  { %p624_p0 = scmp.ne.s32.totalorder %s861_s3, %s623_s27  ;;  %p627_p1 = scmp.lt.u32.totalorder %s623_s27, %s861_s3 }
   0x7   :  { %p629_p2 = pnand %p627_p1, %p624_p0 }
   0x9   :  { %632 = shalt.err (!%p629_p2)
}
   0xa   :  { %s633_s8 = scalar_lea.vmem %s36_s22, 2048  ;;  %p638_p4 = scmp.lt.s32.totalorder %s36_s22, %s36_s22 }
   0xb   :  { %p634_p3 = scmp.ne.s32.totalorder %s36_s22, %s633_s8  ;;  %p639_p5 = scmp.lt.s32.totalorder %s633_s8, %s633_s8 }
   0xd   :  { %p640_p6 = por %p639_p5, %p638_p4 }
   0xf   :  { %p641_p7 = pnand %p640_p6, %p634_p3 }
  0x11   :  { %644 = shalt.err (!%p641_p7)
}
  0x12   :  { %s719_s9 = smov 128   ;;  %s720_s10 = smov 8  }
  0x13   :  { %41 = dma.hbm_to_vmem [thread:$0]  %s861_s3, 2048, %s36_s22, [#allocation6], %s719_s9, %s719_s9, %s720_s10  }
  0x14   :  { %s645_s15 = scalar_lea.hbm %s858_s0, 256 }
  0x15   :  { %p646_p8 = scmp.ne.s32.totalorder %s858_s0, %s645_s15  ;;  %p649_p9 = scmp.lt.u32.totalorder %s645_s15, %s858_s0 }
  0x17   :  { %p651_p10 = pnand %p649_p9, %p646_p8 }
  0x19   :  { %654 = shalt.err (!%p651_p10)
}
  0x1a   :  { %s655_s20 = scalar_lea.vmem %s763_s24, 256  ;;  %p660_p12 = scmp.lt.s32.totalorder %s763_s24, %s763_s24 }
  0x1b   :  { %p656_p11 = scmp.ne.s32.totalorder %s763_s24, %s655_s20  ;;  %p661_p13 = scmp.lt.s32.totalorder %s655_s20, %s655_s20 }
  0x1d   :  { %p662_p0 = por %p661_p13, %p660_p12 }
  0x1f   :  { %p663_p1 = pnand %p662_p0, %p656_p11 }
  0x21   :  { %666 = shalt.err (!%p663_p1)
}
  0x22   :  { %25 = dma.hbm_to_vmem [thread:$0]  %s858_s0, 256, %s763_s24, [#allocation3], %s719_s9, %s719_s9, %s720_s10  }
  0x23   :  { %s721_s22 = smov [#allocation7]   ;;  %s667_s27 = scalar_lea.hbm %s862_s4, 1152 }
  0x24   :  { %s47_s23 = sshll.u32 %s721_s22, 4  ;;  %p668_p2 = scmp.ne.s32.totalorder %s862_s4, %s667_s27  ;;  %s48_s23 = int_to_ptr.vmem [resolvable:$true] %s47_s23 }
  0x25   :  { %p671_p3 = scmp.lt.u32.totalorder %s667_s27, %s862_s4 }
  0x27   :  { %p673_p4 = pnand %p671_p3, %p668_p2 }
  0x29   :  { %676 = shalt.err (!%p673_p4)
}
  0x2a   :  { %s677_s8 = scalar_lea.vmem %s48_s23, 1152  ;;  %p682_p6 = scmp.lt.s32.totalorder %s48_s23, %s48_s23 }
  0x2b   :  { %p678_p5 = scmp.ne.s32.totalorder %s48_s23, %s677_s8  ;;  %p683_p7 = scmp.lt.s32.totalorder %s677_s8, %s677_s8 }
  0x2d   :  { %p684_p8 = por %p683_p7, %p682_p6 }
  0x2f   :  { %p685_p9 = pnand %p684_p8, %p678_p5 }
  0x31   :  { %688 = shalt.err (!%p685_p9)
}
  0x32   :  { %s722_s0 = smov 64   ;;  %s723_s24 = smov 4  }
  0x33   :  { %53 = dma.hbm_to_vmem [thread:$0]  %s862_s4, 1152, %s48_s23, [#allocation6], %s722_s0, %s722_s0, %s723_s24  }
  0x34   :  { %711 = dma.done.wait [#allocation3], 256  }
  0x35   :  { %712 = vsyncadd [#allocation3], 4294967040 }
  0x36   :  { %713 = dma.done.wait [#allocation6], 3200  }
  0x37   :  { %714 = vsyncadd [#allocation6], 4294964096  ;;  %v724_v0 = vmov 0.0   ;;  %vm725_vm0 = vmmov 0   ;;  %v726_v1 = vmov 0   ;;  %v584_v2 = vld [vmem:[%s860_s2] sm:$0xff]   ;;  %v74_v25 = vlaneseq }
  0x38   :  { %538 = vmatprep.subr.bf16.mxu1 %v724_v0  ;;  %542 = vmatprep.mubr.msk.bf16.mxu1 %vm725_vm0, %v724_v0  ;;  %v585_v3 = vld [vmem:[%s860_s2 + $0x8] sm:$0xff]   ;;  %v67_v4 = vld [vmem:[#allocation2] sm:$0xff]  ;;  %v588_v7 = vld [vmem:[#allocation5 + $0x4] ss:$8 sps:$4 sm:$0xff]   ;;  %vm90_vm1 = vcmask 261120   ;;  %vm329_vm3 = vcmask 130048  }
  0x39   :  { %583 = vset.pattern.permute.xlu0 %v726_v1  ;;  %546 = vmatprep.subr.bf16.mxu0 %v724_v0  ;;  %v68_v5 = vld [vmem:[#allocation2 + $0x8] sm:$0xff]  ;;  %v298_v6 = vld [vmem:[%s859_s1] sm:$0xff]  ;;  %v586_v9 = vld [vmem:[#allocation5] ss:$8 sps:$4 sm:$0xff]   ;;  %v823_v26 = vand.u32 127, %v74_v25  ;;  %v75_v36 = vshrl.u32 %v74_v25, 7 }
  0x3a   :  { %548 = vmatprep.mubr.msk.bf16.mxu0 %vm725_vm0, %v724_v0  ;;  %539 = vmatpush3.bf16.msra.mxu1 %v584_v2  ;;  %v69_v8 = vpack.c.bf16 %v68_v5, %v67_v4  ;;  %v591_v10 = vld [vmem:[#allocation5 + $0x14] ss:$8 sps:$4 sm:$0xff]   ;;  %v589_v11 = vld [vmem:[#allocation5 + $0x10] ss:$8 sps:$4 sm:$0xff]   ;;  %v594_v12 = vld [vmem:[#allocation5 + $0x24] ss:$8 sps:$4 sm:$0xff]  }
  0x3b   :  { %540 = vmatprep.subr.bf16.mxu1 %v724_v0  ;;  %300 = vperm.xlu0 %583, %v298_v6   ;;  %v592_v13 = vld [vmem:[#allocation5 + $0x20] ss:$8 sps:$4 sm:$0xff]   ;;  %v597_v14 = vld [vmem:[#allocation5 + $0x34] ss:$8 sps:$4 sm:$0xff]   ;;  %v595_v15 = vld [vmem:[#allocation5 + $0x30] ss:$8 sps:$4 sm:$0xff]  }
  0x3c   :  { %v600_v16 = vld [vmem:[#allocation5 + $0x44] ss:$8 sps:$4 sm:$0xff]   ;;  %v598_v17 = vld [vmem:[#allocation5 + $0x40] ss:$8 sps:$4 sm:$0xff]   ;;  %v603_v18 = vld [vmem:[#allocation5 + $0x54] ss:$8 sps:$4 sm:$0xff]  }
  0x3d   :  { %v601_v19 = vld [vmem:[#allocation5 + $0x50] ss:$8 sps:$4 sm:$0xff]   ;;  %v606_v20 = vld [vmem:[#allocation5 + $0x64] ss:$8 sps:$4 sm:$0xff]   ;;  %v604_v21 = vld [vmem:[#allocation5 + $0x60] ss:$8 sps:$4 sm:$0xff]  }
  0x3e   :  { %541 = vmatpush3.bf16.msra.mxu1 %v585_v3  ;;  %v609_v22 = vld [vmem:[#allocation5 + $0x74] ss:$8 sps:$4 sm:$0xff]   ;;  %v607_v23 = vld [vmem:[#allocation5 + $0x70] ss:$8 sps:$4 sm:$0xff]   ;;  %v610_v24 = vld [vmem:[#allocation7 + $0x40] sm:$0xff]   ;;  %v76_v37 = vsub.s32 0, %v75_v36 }
  0x3f   :  { %234 = vmatprep.subr.bf16.mxu1 %v588_v7  ;;  %547 = vmatpush3.bf16.msra.mxu0 %v610_v24  ;;  %v611_v29 = vld [vmem:[#allocation7] sm:$0xff]   ;;  %v612_v31 = vld [vmem:[#allocation7 + $0x8] sm:$0xff]   ;;  %v613_v32 = vld [vmem:[#allocation7 + $0x10] sm:$0xff]   ;;  %v277_v54 = vsub.s32 1, %v75_v36  ;;  %v282_v55 = vsub.s32 2, %v75_v36  ;;  %vm287_vm4 = vcmp.lt.s32.totalorder %v823_v26, 4 }
  0x40   :  { %552 = vmatprep.subr.bf16.mxu0 %v724_v0  ;;  %v614_v33 = vld [vmem:[#allocation7 + $0x18] sm:$0xff]   ;;  %v615_v34 = vld [vmem:[#allocation7 + $0x20] sm:$0xff]   ;;  %v616_v35 = vld [vmem:[#allocation7 + $0x28] sm:$0xff]   ;;  %vm474_vm5 = vcmp.eq.s32.totalorder %v823_v26, 5  ;;  %vm473_vm6 = vcmp.eq.s32.totalorder %v823_v26, 4 }
  0x41   :  { %543 = vmatmul.mubr.msk.bf16.vlgmr.msra.gmra.mrb[0].mxu1 %vm90_vm1, %v69_v8  ;;  %v66_v38 = vld [vmem:[%s863_s5] sm:$0xf]  ;;  %v618_v49 = vld [vmem:[#allocation7 + $0x38] sm:$0xff]   ;;  %v378_v8 = vsub.s32 3, %v75_v36  ;;  %s727_s5 = smov [#allocation8]  }
  0x42   :  { %235 = vmatpush1.bf16.msra.mxu1 %v586_v9  ;;  %266 = vmatprep.mubr.bf16.mxu1 %v726_v1  ;;  %v77_v39 = vrot.slane %v66_v38, %v76_v37  ;;  %v617_v48 = vld [vmem:[#allocation7 + $0x30] sm:$0xff]   ;;  %v278_v56 = vrot.slane %v66_v38, %v277_v54  ;;  %v283_v57 = vrot.slane %v66_v38, %v282_v55  ;;  %s485_s16 = sshll.u32 %s727_s5, 4  ;;  %s486_s16 = int_to_ptr.vmem [resolvable:$true] %s485_s16 }
  0x43   :  { %236 = vmatprep.subr.bf16.mxu1 %v591_v10  ;;  %v379_v9 = vrot.slane %v66_v38, %v378_v8  ;;  %s689_s17 = scalar_lea.vmem %s486_s16, 128  ;;  %p694_p11 = scmp.lt.s32.totalorder %s486_s16, %s486_s16 }
  0x44   :  { %p690_p10 = scmp.ne.s32.totalorder %s486_s16, %s689_s17  ;;  %p695_p12 = scmp.lt.s32.totalorder %s689_s17, %s689_s17 }
  0x46   :  { %237 = vmatpush1.bf16.msra.mxu1 %v589_v11  ;;  %p696_p13 = por %p695_p12, %p694_p11 }
  0x47   :  { %238 = vmatprep.subr.bf16.mxu1 %v594_v12 }
  0x48   :  { %p697_p0 = pnand %p696_p13, %p690_p10 }
  0x4a   :  { %239 = vmatpush1.bf16.msra.mxu1 %v592_v13 }
  0x4b   :  { %240 = vmatprep.subr.bf16.mxu1 %v597_v14 }
  0x4e   :  { %241 = vmatpush1.bf16.msra.mxu1 %v595_v15 }
  0x4f   :  { %242 = vmatprep.subr.bf16.mxu1 %v600_v16 }
  0x52   :  { %243 = vmatpush1.bf16.msra.mxu1 %v598_v17 }
  0x53   :  { %244 = vmatprep.subr.bf16.mxu1 %v603_v18 }
  0x56   :  { %245 = vmatpush1.bf16.msra.mxu1 %v601_v19 }
  0x57   :  { %246 = vmatprep.subr.bf16.mxu1 %v606_v20 }
  0x5a   :  { %247 = vmatpush1.bf16.msra.mxu1 %v604_v21 }
  0x5b   :  { %248 = vmatprep.subr.bf16.mxu1 %v609_v22 }
  0x5e   :  { %249 = vmatpush1.bf16.msra.mxu1 %v607_v23 }
  0xba   :  { %v301_v27 = vpop.permute.xlu0 %300 }
  0xbb   :  { %vm302_vm2 = vcmp.eq.s32.totalorder %v823_v26, %v301_v27 }
  0xbc   :  { %v303_v28 = vsel %vm302_vm2, 1.0, %v724_v0 }
  0xbd   :  { %v304_v30 = vpack.c.bf16 %v303_v28, %v303_v28 }
  0xbf   :  { %549 = vmatmul.mubr.msk.bf16.vlgmr.msra.gmra.mrb[0].mxu0 %vm329_vm3, %v304_v30 }
  0xc0   :  { %553 = vmatpush3.bf16.msra.mxu0 %v611_v29  ;;  %568 = vmatprep.mubr.msk.bf16.mxu0 %vm725_vm0, %v724_v0 }
  0xc1   :  { %554 = vmatprep.subr.bf16.mxu0 %v724_v0 }
  0xc4   :  { %555 = vmatpush3.bf16.msra.mxu0 %v612_v31 }
  0xc5   :  { %556 = vmatprep.subr.bf16.mxu0 %v724_v0 }
  0xc8   :  { %557 = vmatpush3.bf16.msra.mxu0 %v613_v32 }
  0xc9   :  { %558 = vmatprep.subr.bf16.mxu0 %v724_v0 }
  0xcc   :  { %559 = vmatpush3.bf16.msra.mxu0 %v614_v33 }
  0xcd   :  { %560 = vmatprep.subr.bf16.mxu0 %v724_v0 }
  0xd0   :  { %561 = vmatpush3.bf16.msra.mxu0 %v615_v34 }
  0xd1   :  { %562 = vmatprep.subr.bf16.mxu0 %v724_v0 }
  0xd4   :  { %563 = vmatpush3.bf16.msra.mxu0 %v616_v35 }
  0xd5   :  { %564 = vmatprep.subr.bf16.mxu0 %v724_v0 }
  0xd8   :  { %565 = vmatpush3.bf16.msra.mxu0 %v617_v48 }
  0xd9   :  { %566 = vmatprep.subr.bf16.mxu0 %v724_v0 }
  0xdc   :  { %567 = vmatpush3.bf16.msra.mxu0 %v618_v49 }
 0x114   :  { %v128_v40 = vpop.f32.mrb[0].mxu1 }
 0x115   :  { %v129_v41 = vadd.f32 %v128_v40, %v77_v39  ;;  %v544_v42 = vpop.f32.mrb[1].mxu1 }
 0x116   :  { %v131_v43 = vpop.f32.mrb[2].mxu1 }
 0x117   :  { %v135_v44 = vmax.f32 %v129_v41, 0.0  ;;  %v132_v45 = vadd.f32 %v131_v43, %v77_v39  ;;  %v545_v46 = vpop.f32.mrb[3].mxu1 }
 0x119   :  { %v137_v47 = vpack.c.bf16 %v135_v44, %v135_v44  ;;  %v136_v11 = vmax.f32 %v132_v45, 0.0 }
 0x11b   :  { %267 = vmatmul.mubr.bf16.vlgmr.msra.gmra.mrb[4].mxu1 %v137_v47 }
 0x192   :  { %v367_v50 = vpop.f32.mrb[0].mxu0 }
 0x193   :  { %v550_v51 = vpop.f32.mrb[1].mxu0 }
 0x194   :  { %v370_v52 = vpop.f32.mrb[2].mxu0 }
 0x195   :  { %v551_v53 = vpop.f32.mrb[3].mxu0 }
 0x1ee   :  { %v268_v58 = vpop.f32.mrb[4].mxu1 }
 0x1ef   :  { %v279_v59 = vadd.f32 %v278_v56, %v268_v58  ;;  %v270_v60 = vpop.f32.mrb[5].mxu1 }
 0x1f0   :  { %v284_v61 = vadd.f32 %v283_v57, %v270_v60  ;;  %v272_v62 = vpop.f32.mrb[6].mxu1 }
 0x1f1   :  { %v273_v63 = vpop.f32.mrb[7].mxu1  ;;  %v288_v0 = vsel %vm287_vm4, %v279_v59, -1e+30 }
 0x1f2   :  { %v373_v1 = vadd.f32 %v367_v50, %v284_v61  ;;  %289 = vmax.xlane.f32.xlu0 %v288_v0 }
 0x1f4   :  { %v374_v2 = vmax.f32 %v373_v1, 0.0 }
 0x1f6   :  { %v375_v3 = vpack.c.bf16 %v374_v2, %v374_v2 }
 0x1f8   :  { %569 = vmatmul.mubr.bf16.vlgmr.msra.gmra.mrb[4].mxu0 %v375_v3 }
 0x27f   :  { %v290_v4 = vpop.xlane.xlu0 %289 }
 0x280   :  { %v291_v5 = vsub.f32 %v288_v0, %v290_v4 }
 0x282   :  { %v292_v6 = vmul.f32 1.442695, %v291_v5 }
 0x284   :  { %619 = vpow2.f32 %v292_v6 }
 0x28e   :  { %v620_v7 = vpop.eup %619 }
 0x28f   :  { %294 = vadd.xlane.f32.xlu1 %v620_v7 }
 0x2cb   :  { %v462_v10 = vpop.f32.mrb[4].mxu0 }
 0x2cc   :  { %v463_v12 = vadd.f32 %v462_v10, %v379_v9  ;;  %v570_v13 = vpop.f32.mrb[5].mxu0 }
 0x2cd   :  { %v465_v14 = vpop.f32.mrb[6].mxu0 }
 0x2ce   :  { %v571_v15 = vpop.f32.mrb[7].mxu0  ;;  %v468_v16 = vsub.f32 %v463_v12, %v136_v11 }
 0x2d0   :  { %v469_v17 = vmul.f32 %v468_v16, %v468_v16 }
 0x2d2   :  { %470 = vadd.xlane.f32.xlu1 %v469_v17 }
 0x31c   :  { %v295_v18 = vpop.xlane.xlu1 %294 }
 0x31d   :  { %621 = vrcp.f32 %v295_v18 }
 0x327   :  { %v622_v19 = vpop.eup %621 }
 0x328   :  { %v297_v23 = vmul.f32 %v622_v19, %v620_v7 }
 0x35f   :  { %v471_v20 = vpop.xlane.xlu1 %470 }
 0x360   :  { %v472_v21 = vmul.f32 0.5, %v471_v20 }
 0x362   :  { %v475_v22 = vsel %vm474_vm5, %v472_v21, 0.0 }
 0x363   :  { %v476_v24 = vsel %vm473_vm6, %v279_v59, %v475_v22 }
 0x364   :  { %v477_v25 = vsel %vm287_vm4, %v297_v23, %v476_v24 }
 0x365   :  { %478 = vst [vmem:[#allocation8] sm:$0xff] %v477_v25 }
 0x366   :  { %700 = shalt.err (!%p697_p0)
}
 0x367   :  { %s701_s20 = scalar_lea.hbm %s864_s6, 128 }
 0x368   :  { %p702_p1 = scmp.ne.s32.totalorder %s864_s6, %s701_s20  ;;  %p705_p2 = scmp.lt.u32.totalorder %s701_s20, %s864_s6 }
 0x36a   :  { %p707_p3 = pnand %p705_p2, %p702_p1 }
 0x36c   :  { %710 = shalt.err (!%p707_p3)
}
 0x36d   :  { %488 = dma.vmem_to_hbm [thread:$0]  %s486_s16, 128, %s864_s6, [#allocation4]  }
 0x36e   :  { %715 = dma.done.wait [#allocation4], 128  }
 0x36f   :  { %716 = vsyncadd [#allocation4], 4294967168 }
 0x370   :  { %492 = vsyncpa [#allocation3], 1 }
 0x371   :  { %493 = vsyncpa [#allocation6], 1 }
 0x372   :  { %494 = vsyncpa [#allocation4], 1 }

</bundles_post_ra>
